<compile_context>
chip_gen: v6e
topology: v6e:2x2x1
jax: 0.10.0
libtpu: 0.0.40
codegen_flags: <defaults>
</compile_context>

<pallas_src>
import functools

import jax
import jax.numpy as jnp
from jax.experimental import pallas as pl
from jax.experimental.pallas import tpu as pltpu


def _round_up(x: int, m: int) -> int:
    return ((x + m - 1) // m) * m


_INV_SQRT2 = 0.7071067811865476


def _gelu_exact(x):
    # matches torch.nn.GELU() default (erf-based)
    return 0.5 * x * (1.0 + jax.lax.erf(x * _INV_SQRT2))


def _make_sarsa_kernel(hidden_dim: int, action_dim: int):
    """Kernel closure over the TRUE (unpadded) hidden/action dims."""
    inv_h = 1.0 / float(hidden_dim)

    def sarsa_kernel(
        x_ref,              # (TB, Sp)
        w1_ref, b1_ref,     # (Sp, Hp), (1, Hp)   state_encoder linear 1
        g_ref, be_ref,      # (1, Hp), (1, Hp)    LayerNorm gamma / beta (zero-padded)
        w2_ref, b2_ref,     # (Hp, Hp), (1, Hp)   state_encoder linear 2
        wp1_ref, bp1_ref,   # (Hp, Hp), (1, Hp)   policy linear 1
        wp2_ref, bp2_ref,   # (Hp, Ap), (1, Ap)   policy linear 2
        probs_ref,          # (TB, Ap) out: action_probs (padded cols == 0)
        feats_ref,          # (TB, Hp) out: state_features (padded cols == 0)
    ):
        x = x_ref[...]

        # --- state encoder ---
        h = jnp.dot(x, w1_ref[...], preferred_element_type=jnp.float32) + b1_ref[...]
        # Padded hidden columns of h are exactly 0 (zero-padded x cols / w1 / b1),
        # so full-row sums equal valid-column sums; divide by the true H.
        mean = jnp.sum(h, axis=-1, keepdims=True) * inv_h
        ex2 = jnp.sum(h * h, axis=-1, keepdims=True) * inv_h
        var = ex2 - mean * mean
        # Fold gamma into the rsqrt scale; padded gamma/beta are 0 so padded
        # columns come out exactly 0 again.
        scale = jax.lax.rsqrt(var + 1e-5) * g_ref[...]
        h = h * scale + (be_ref[...] - mean * scale)
        h = _gelu_exact(h)
        feats = jnp.dot(h, w2_ref[...], preferred_element_type=jnp.float32) + b2_ref[...]
        feats_ref[...] = feats

        # --- policy head ---
        p = jnp.dot(feats, wp1_ref[...], preferred_element_type=jnp.float32) + bp1_ref[...]
        p = _gelu_exact(p)
        logits = jnp.dot(p, wp2_ref[...], preferred_element_type=jnp.float32) + bp2_ref[...]
        # Mask padded action columns so they get zero probability mass.
        col = jax.lax.broadcasted_iota(jnp.int32, logits.shape, dimension=1)
        logits = jnp.where(col < action_dim, logits, -jnp.inf)
        m = jnp.max(logits, axis=-1, keepdims=True)
        e = jnp.exp(logits - m)
        denom = jnp.sum(e, axis=-1, keepdims=True)
        probs_ref[...] = e * pl.reciprocal(denom, approx=False)  # exact: keeps sum==1

    return sarsa_kernel


def _pad2(a, rows, cols):
    r, c = a.shape
    return jnp.pad(a, ((0, rows - r), (0, cols - c)))


@functools.partial(jax.jit, static_argnames=("batch_tile",))
def temporal_sarsa_forward(state, params, *, batch_tile: int = 512):
    """state: (B, state_dim) f32. Returns (action_probs (B, A), state_features (B, H))."""
    B, S = state.shape
    H = params["w2"].shape[1]
    A = params["wp2"].shape[1]

    # Lane-dense padded dims (last dim multiple of 128, sublane multiple of 8).
    Sp = _round_up(S, 128)
    Hp = _round_up(H, 128)
    Ap = _round_up(A, 128)
    TB = min(batch_tile, _round_up(B, 8))
    Bp = _round_up(B, TB)

    x_p = jnp.pad(state, ((0, Bp - B), (0, Sp - S)))
    w1 = _pad2(params["w1"], Sp, Hp)
    b1 = _pad2(params["b1"], 1, Hp)
    g = _pad2(params["ln_g"], 1, Hp)
    be = _pad2(params["ln_b"], 1, Hp)
    w2 = _pad2(params["w2"], Hp, Hp)
    b2 = _pad2(params["b2"], 1, Hp)
    wp1 = _pad2(params["wp1"], Hp, Hp)
    bp1 = _pad2(params["bp1"], 1, Hp)
    wp2 = _pad2(params["wp2"], Hp, Ap)
    bp2 = _pad2(params["bp2"], 1, Ap)

    # Weights/biases: full-array block, constant index_map -> VMEM-resident,
    # no re-DMA across grid steps.
    def const_spec(arr):
        return pl.BlockSpec(arr.shape, lambda i: (0, 0))

    in_specs = [
        pl.BlockSpec((TB, Sp), lambda i: (i, 0)),        # x tile
        const_spec(w1), const_spec(b1),
        const_spec(g), const_spec(be),
        const_spec(w2), const_spec(b2),
        const_spec(wp1), const_spec(bp1),
        const_spec(wp2), const_spec(bp2),
    ]
    out_specs = (
        pl.BlockSpec((TB, Ap), lambda i: (i, 0)),        # probs tile (lane-dense)
        pl.BlockSpec((TB, Hp), lambda i: (i, 0)),        # feats tile (lane-dense)
    )

    # VMEM budget: resident weights + double-buffered activation tiles, with headroom.
    f32 = 4
    weight_bytes = (Sp * Hp + 2 * Hp * Hp + Hp * Ap + 6 * Hp + Ap) * f32
    act_bytes = 2 * TB * (Sp + Hp + Ap) * f32            # in + out tiles, double-buffered
    vmem_limit = min(int((weight_bytes + 4 * act_bytes) * 1.5) + (8 << 20), 120 << 20)

    probs_p, feats_p = pl.pallas_call(
        _make_sarsa_kernel(H, A),
        out_shape=(
            jax.ShapeDtypeStruct((Bp, Ap), jnp.float32),
            jax.ShapeDtypeStruct((Bp, Hp), jnp.float32),
        ),
        grid=(Bp // TB,),
        in_specs=in_specs,
        out_specs=out_specs,
        compiler_params=pltpu.CompilerParams(
            dimension_semantics=("parallel",),
            vmem_limit_bytes=vmem_limit,
        ),
    )(x_p, w1, b1, g, be, w2, b2, wp1, bp1, wp2, bp2)

    # Strip padding for the caller.
    return probs_p[:B, :A], feats_p[:B, :H]


def init_params(key, state_dim, action_dim, hidden_dim):
    """Deterministic synthetic init. Weights stored as (in, out) [already transposed]."""
    ks = jax.random.split(key, 4)

    def lin(k, fan_in, fan_out):
        kw, kb = jax.random.split(k)
        lim = 1.0 / jnp.sqrt(fan_in)
        w = jax.random.uniform(kw, (fan_in, fan_out), jnp.float32, -lim, lim)
        b = jax.random.uniform(kb, (1, fan_out), jnp.float32, -lim, lim)
        return w, b

    w1, b1 = lin(ks[0], state_dim, hidden_dim)
    w2, b2 = lin(ks[1], hidden_dim, hidden_dim)
    wp1, bp1 = lin(ks[2], hidden_dim, hidden_dim)
    wp2, bp2 = lin(ks[3], hidden_dim, action_dim)
    return {
        "w1": w1, "b1": b1,
        "ln_g": jnp.ones((1, hidden_dim), jnp.float32),
        "ln_b": jnp.zeros((1, hidden_dim), jnp.float32),
        "w2": w2, "b2": b2,
        "wp1": wp1, "bp1": bp1,
        "wp2": wp2, "bp2": bp2,
    }


def _reference_forward(state, p):
    # pure-JAX reference (unpadded) for sanity checking
    gelu = lambda x: jax.nn.gelu(x, approximate=False)
    h = state @ p["w1"] + p["b1"]
    mu = h.mean(-1, keepdims=True)
    var = ((h - mu) ** 2).mean(-1, keepdims=True)
    h = (h - mu) / jnp.sqrt(var + 1e-5) * p["ln_g"] + p["ln_b"]
    feats = gelu(h) @ p["w2"] + p["b2"]
    q = gelu(feats @ p["wp1"] + p["bp1"]) @ p["wp2"] + p["bp2"]
    return jax.nn.softmax(q, axis=-1), feats


if __name__ == "__main__":
    # TODO(synk): q_network + Dropout from the module are not exercised by forward();
    # Dropout would be a no-op in eval anyway.
    state_dim, action_dim, hidden_dim, batch = 16, 4, 32, 8

    key = jax.random.PRNGKey(0)
    kp, kx = jax.random.split(key)
    params = init_params(kp, state_dim, action_dim, hidden_dim)
    state = jax.random.normal(kx, (batch, state_dim), jnp.float32)

    probs, feats = temporal_sarsa_forward(state, params)
    probs = jax.block_until_ready(probs)
    feats = jax.block_until_ready(feats)

    ref_probs, ref_feats = _reference_forward(state, params)
    assert probs.shape == (batch, action_dim) and feats.shape == (batch, hidden_dim)
    assert jnp.allclose(probs, ref_probs, atol=1e-5, rtol=1e-5)
    assert jnp.allclose(feats, ref_feats, atol=1e-5, rtol=1e-5)
    assert jnp.allclose(probs.sum(-1), 1.0, atol=1e-5)

    print("KERNEL_OK")
</pallas_src>

<mosaic_0001>
module attributes {stable_mosaic.version = 11 : i64} {
  func.func @sarsa_kernel(%arg0: i32, %arg1: memref<8x128xf32, #tpu.memory_space<vmem>>, %arg2: memref<128x128xf32, #tpu.memory_space<vmem>>, %arg3: memref<1x128xf32, #tpu.memory_space<vmem>>, %arg4: memref<1x128xf32, #tpu.memory_space<vmem>>, %arg5: memref<1x128xf32, #tpu.memory_space<vmem>>, %arg6: memref<128x128xf32, #tpu.memory_space<vmem>>, %arg7: memref<1x128xf32, #tpu.memory_space<vmem>>, %arg8: memref<128x128xf32, #tpu.memory_space<vmem>>, %arg9: memref<1x128xf32, #tpu.memory_space<vmem>>, %arg10: memref<128x128xf32, #tpu.memory_space<vmem>>, %arg11: memref<1x128xf32, #tpu.memory_space<vmem>>, %arg12: memref<8x128xf32, #tpu.memory_space<vmem>>, %arg13: memref<8x128xf32, #tpu.memory_space<vmem>>) attributes {dimension_semantics = [#tpu.dimension_semantics<parallel>], iteration_bounds = array<i64: 1>, scalar_prefetch = 0 : i64, scratch_operands = 0 : i64, tpu.core_type = #tpu.core_type<tc>, window_params = [{transform_indices = @transform_0, window_bounds = array<i64: 8, 128>}, {pipeline_mode = #tpu.pipeline_mode<synchronous>, transform_indices = @transform_1, window_bounds = array<i64: 128, 128>}, {pipeline_mode = #tpu.pipeline_mode<synchronous>, transform_indices = @transform_2, window_bounds = array<i64: 1, 128>}, {pipeline_mode = #tpu.pipeline_mode<synchronous>, transform_indices = @transform_3, window_bounds = array<i64: 1, 128>}, {pipeline_mode = #tpu.pipeline_mode<synchronous>, transform_indices = @transform_4, window_bounds = array<i64: 1, 128>}, {pipeline_mode = #tpu.pipeline_mode<synchronous>, transform_indices = @transform_5, window_bounds = array<i64: 128, 128>}, {pipeline_mode = #tpu.pipeline_mode<synchronous>, transform_indices = @transform_6, window_bounds = array<i64: 1, 128>}, {pipeline_mode = #tpu.pipeline_mode<synchronous>, transform_indices = @transform_7, window_bounds = array<i64: 128, 128>}, {pipeline_mode = #tpu.pipeline_mode<synchronous>, transform_indices = @transform_8, window_bounds = array<i64: 1, 128>}, {pipeline_mode = #tpu.pipeline_mode<synchronous>, transform_indices = @transform_9, window_bounds = array<i64: 128, 128>}, {pipeline_mode = #tpu.pipeline_mode<synchronous>, transform_indices = @transform_10, window_bounds = array<i64: 1, 128>}, {transform_indices = @transform_11, window_bounds = array<i64: 8, 128>}, {transform_indices = @transform_12, window_bounds = array<i64: 8, 128>}]} {
    %c0 = arith.constant 0 : index
    %c0_0 = arith.constant 0 : index
    %0 = vector.load %arg1[%c0, %c0_0] : memref<8x128xf32, #tpu.memory_space<vmem>>, vector<8x128xf32>
    %c0_1 = arith.constant 0 : index
    %c0_2 = arith.constant 0 : index
    %1 = vector.load %arg2[%c0_1, %c0_2] : memref<128x128xf32, #tpu.memory_space<vmem>>, vector<128x128xf32>
    %cst = arith.constant dense<0.000000e+00> : vector<8x128xf32>
    %2 = tpu.matmul %0, %1, %cst {dimension_numbers = #tpu.dot_dimension_numbers<[1], [0], [0], [1], [0, 0, 1, 1], [], []>} : vector<8x128xf32>, vector<128x128xf32>, vector<8x128xf32> -> vector<8x128xf32>
    %c0_3 = arith.constant 0 : index
    %c0_4 = arith.constant 0 : index
    %3 = vector.load %arg3[%c0_3, %c0_4] : memref<1x128xf32, #tpu.memory_space<vmem>>, vector<1x128xf32>
    %4 = vector.broadcast %3 : vector<1x128xf32> to vector<8x128xf32>
    %5 = arith.addf %2, %4 : vector<8x128xf32>
    %cst_5 = arith.constant dense<0.000000e+00> : vector<8xf32>
    %6 = vector.multi_reduction <add>, %5, %cst_5 [1] : vector<8x128xf32> to vector<8xf32>
    %7 = vector.shape_cast %6 : vector<8xf32> to vector<8x1xf32>
    %cst_6 = arith.constant 3.125000e-02 : f32
    %8 = vector.broadcast %cst_6 : f32 to vector<8x1xf32>
    %9 = arith.mulf %7, %8 : vector<8x1xf32>
    %10 = arith.mulf %5, %5 : vector<8x128xf32>
    %cst_7 = arith.constant dense<0.000000e+00> : vector<8xf32>
    %11 = vector.multi_reduction <add>, %10, %cst_7 [1] : vector<8x128xf32> to vector<8xf32>
    %12 = vector.shape_cast %11 : vector<8xf32> to vector<8x1xf32>
    %cst_8 = arith.constant 3.125000e-02 : f32
    %13 = vector.broadcast %cst_8 : f32 to vector<8x1xf32>
    %14 = arith.mulf %12, %13 : vector<8x1xf32>
    %15 = arith.mulf %9, %9 : vector<8x1xf32>
    %16 = arith.subf %14, %15 : vector<8x1xf32>
    %cst_9 = arith.constant 9.99999974E-6 : f32
    %17 = vector.broadcast %cst_9 : f32 to vector<8x1xf32>
    %18 = arith.addf %16, %17 : vector<8x1xf32>
    %19 = math.rsqrt %18 : vector<8x1xf32>
    %c0_10 = arith.constant 0 : index
    %c0_11 = arith.constant 0 : index
    %20 = vector.load %arg4[%c0_10, %c0_11] : memref<1x128xf32, #tpu.memory_space<vmem>>, vector<1x128xf32>
    %21 = vector.broadcast %19 : vector<8x1xf32> to vector<8x128xf32>
    %22 = vector.broadcast %20 : vector<1x128xf32> to vector<8x128xf32>
    %23 = arith.mulf %21, %22 : vector<8x128xf32>
    %24 = arith.mulf %5, %23 : vector<8x128xf32>
    %c0_12 = arith.constant 0 : index
    %c0_13 = arith.constant 0 : index
    %25 = vector.load %arg5[%c0_12, %c0_13] : memref<1x128xf32, #tpu.memory_space<vmem>>, vector<1x128xf32>
    %26 = vector.broadcast %9 : vector<8x1xf32> to vector<8x128xf32>
    %27 = arith.mulf %26, %23 : vector<8x128xf32>
    %28 = vector.broadcast %25 : vector<1x128xf32> to vector<8x128xf32>
    %29 = arith.subf %28, %27 : vector<8x128xf32>
    %30 = arith.addf %24, %29 : vector<8x128xf32>
    %cst_14 = arith.constant 5.000000e-01 : f32
    %31 = vector.broadcast %cst_14 : f32 to vector<8x128xf32>
    %32 = arith.mulf %31, %30 : vector<8x128xf32>
    %cst_15 = arith.constant 0.707106769 : f32
    %33 = vector.broadcast %cst_15 : f32 to vector<8x128xf32>
    %34 = arith.mulf %30, %33 : vector<8x128xf32>
    %35 = math.erf %34 : vector<8x128xf32>
    %cst_16 = arith.constant 1.000000e+00 : f32
    %36 = vector.broadcast %cst_16 : f32 to vector<8x128xf32>
    %37 = arith.addf %36, %35 : vector<8x128xf32>
    %38 = arith.mulf %32, %37 : vector<8x128xf32>
    %c0_17 = arith.constant 0 : index
    %c0_18 = arith.constant 0 : index
    %39 = vector.load %arg6[%c0_17, %c0_18] : memref<128x128xf32, #tpu.memory_space<vmem>>, vector<128x128xf32>
    %cst_19 = arith.constant dense<0.000000e+00> : vector<8x128xf32>
    %40 = tpu.matmul %38, %39, %cst_19 {dimension_numbers = #tpu.dot_dimension_numbers<[1], [0], [0], [1], [0, 0, 1, 1], [], []>} : vector<8x128xf32>, vector<128x128xf32>, vector<8x128xf32> -> vector<8x128xf32>
    %c0_20 = arith.constant 0 : index
    %c0_21 = arith.constant 0 : index
    %41 = vector.load %arg7[%c0_20, %c0_21] : memref<1x128xf32, #tpu.memory_space<vmem>>, vector<1x128xf32>
    %42 = vector.broadcast %41 : vector<1x128xf32> to vector<8x128xf32>
    %43 = arith.addf %40, %42 : vector<8x128xf32>
    %c0_22 = arith.constant 0 : index
    %c0_23 = arith.constant 0 : index
    %44 = vector.load %arg13[%c0_22, %c0_23] : memref<8x128xf32, #tpu.memory_space<vmem>>, vector<8x128xf32>
    tpu.vector_store %arg13[%c0_22, %c0_23], %43 {strides = array<i32>} : memref<8x128xf32, #tpu.memory_space<vmem>>, vector<8x128xf32>,
    %c0_24 = arith.constant 0 : index
    %c0_25 = arith.constant 0 : index
    %45 = vector.load %arg8[%c0_24, %c0_25] : memref<128x128xf32, #tpu.memory_space<vmem>>, vector<128x128xf32>
    %cst_26 = arith.constant dense<0.000000e+00> : vector<8x128xf32>
    %46 = tpu.matmul %43, %45, %cst_26 {dimension_numbers = #tpu.dot_dimension_numbers<[1], [0], [0], [1], [0, 0, 1, 1], [], []>} : vector<8x128xf32>, vector<128x128xf32>, vector<8x128xf32> -> vector<8x128xf32>
    %c0_27 = arith.constant 0 : index
    %c0_28 = arith.constant 0 : index
    %47 = vector.load %arg9[%c0_27, %c0_28] : memref<1x128xf32, #tpu.memory_space<vmem>>, vector<1x128xf32>
    %48 = vector.broadcast %47 : vector<1x128xf32> to vector<8x128xf32>
    %49 = arith.addf %46, %48 : vector<8x128xf32>
    %cst_29 = arith.constant 5.000000e-01 : f32
    %50 = vector.broadcast %cst_29 : f32 to vector<8x128xf32>
    %51 = arith.mulf %50, %49 : vector<8x128xf32>
    %cst_30 = arith.constant 0.707106769 : f32
    %52 = vector.broadcast %cst_30 : f32 to vector<8x128xf32>
    %53 = arith.mulf %49, %52 : vector<8x128xf32>
    %54 = math.erf %53 : vector<8x128xf32>
    %cst_31 = arith.constant 1.000000e+00 : f32
    %55 = vector.broadcast %cst_31 : f32 to vector<8x128xf32>
    %56 = arith.addf %55, %54 : vector<8x128xf32>
    %57 = arith.mulf %51, %56 : vector<8x128xf32>
    %c0_32 = arith.constant 0 : index
    %c0_33 = arith.constant 0 : index
    %58 = vector.load %arg10[%c0_32, %c0_33] : memref<128x128xf32, #tpu.memory_space<vmem>>, vector<128x128xf32>
    %cst_34 = arith.constant dense<0.000000e+00> : vector<8x128xf32>
    %59 = tpu.matmul %57, %58, %cst_34 {dimension_numbers = #tpu.dot_dimension_numbers<[1], [0], [0], [1], [0, 0, 1, 1], [], []>} : vector<8x128xf32>, vector<128x128xf32>, vector<8x128xf32> -> vector<8x128xf32>
    %c0_35 = arith.constant 0 : index
    %c0_36 = arith.constant 0 : index
    %60 = vector.load %arg11[%c0_35, %c0_36] : memref<1x128xf32, #tpu.memory_space<vmem>>, vector<1x128xf32>
    %61 = vector.broadcast %60 : vector<1x128xf32> to vector<8x128xf32>
    %62 = arith.addf %59, %61 : vector<8x128xf32>
    %63 = tpu.iota {dimensions = array<i32: 1>} : vector<8x128xi32>
    %c4_i32 = arith.constant 4 : i32
    %64 = vector.broadcast %c4_i32 : i32 to vector<8x128xi32>
    %65 = arith.cmpi slt, %63, %64 : vector<8x128xi32>
    %cst_37 = arith.constant 0xFF800000 : f32
    %66 = vector.broadcast %cst_37 : f32 to vector<8x128xf32>
    %67 = arith.select %65, %62, %66 : vector<8x128xi1>, vector<8x128xf32>
    %cst_38 = arith.constant dense<0xFF800000> : vector<8xf32>
    %68 = vector.multi_reduction <maximumf>, %67, %cst_38 [1] : vector<8x128xf32> to vector<8xf32>
    %69 = vector.shape_cast %68 : vector<8xf32> to vector<8x1xf32>
    %70 = vector.broadcast %69 : vector<8x1xf32> to vector<8x128xf32>
    %71 = arith.subf %67, %70 : vector<8x128xf32>
    %72 = math.exp %71 : vector<8x128xf32>
    %cst_39 = arith.constant dense<0.000000e+00> : vector<8xf32>
    %73 = vector.multi_reduction <add>, %72, %cst_39 [1] : vector<8x128xf32> to vector<8xf32>
    %74 = vector.shape_cast %73 : vector<8xf32> to vector<8x1xf32>
    %75 = tpu.reciprocal %74 : vector<8x1xf32> -> vector<8x1xf32>
    %76 = vector.broadcast %75 : vector<8x1xf32> to vector<8x128xf32>
    %77 = arith.mulf %72, %76 : vector<8x128xf32>
    %c0_40 = arith.constant 0 : index
    %c0_41 = arith.constant 0 : index
    %78 = vector.load %arg12[%c0_40, %c0_41] : memref<8x128xf32, #tpu.memory_space<vmem>>, vector<8x128xf32>
    tpu.vector_store %arg12[%c0_40, %c0_41], %77 {strides = array<i32>} : memref<8x128xf32, #tpu.memory_space<vmem>>, vector<8x128xf32>,
    return
  }
  func.func @transform_0(%arg0: i32) -> (i32, i32) {
    %c0_i32 = arith.constant 0 : i32
    %c0_i32_0 = arith.constant 0 : i32
    return %arg0, %c0_i32 : i32, i32
  }
  func.func @transform_1(%arg0: i32) -> (i32, i32) {
    %c0_i32 = arith.constant 0 : i32
    %c0_i32_0 = arith.constant 0 : i32
    %c0_i32_1 = arith.constant 0 : i32
    return %c0_i32, %c0_i32_0 : i32, i32
  }
  func.func @transform_2(%arg0: i32) -> (i32, i32) {
    %c0_i32 = arith.constant 0 : i32
    %c0_i32_0 = arith.constant 0 : i32
    %c0_i32_1 = arith.constant 0 : i32
    return %c0_i32, %c0_i32_0 : i32, i32
  }
  func.func @transform_3(%arg0: i32) -> (i32, i32) {
    %c0_i32 = arith.constant 0 : i32
    %c0_i32_0 = arith.constant 0 : i32
    %c0_i32_1 = arith.constant 0 : i32
    return %c0_i32, %c0_i32_0 : i32, i32
  }
  func.func @transform_4(%arg0: i32) -> (i32, i32) {
    %c0_i32 = arith.constant 0 : i32
    %c0_i32_0 = arith.constant 0 : i32
    %c0_i32_1 = arith.constant 0 : i32
    return %c0_i32, %c0_i32_0 : i32, i32
  }
  func.func @transform_5(%arg0: i32) -> (i32, i32) {
    %c0_i32 = arith.constant 0 : i32
    %c0_i32_0 = arith.constant 0 : i32
    %c0_i32_1 = arith.constant 0 : i32
    return %c0_i32, %c0_i32_0 : i32, i32
  }
  func.func @transform_6(%arg0: i32) -> (i32, i32) {
    %c0_i32 = arith.constant 0 : i32
    %c0_i32_0 = arith.constant 0 : i32
    %c0_i32_1 = arith.constant 0 : i32
    return %c0_i32, %c0_i32_0 : i32, i32
  }
  func.func @transform_7(%arg0: i32) -> (i32, i32) {
    %c0_i32 = arith.constant 0 : i32
    %c0_i32_0 = arith.constant 0 : i32
    %c0_i32_1 = arith.constant 0 : i32
    return %c0_i32, %c0_i32_0 : i32, i32
  }
  func.func @transform_8(%arg0: i32) -> (i32, i32) {
    %c0_i32 = arith.constant 0 : i32
    %c0_i32_0 = arith.constant 0 : i32
    %c0_i32_1 = arith.constant 0 : i32
    return %c0_i32, %c0_i32_0 : i32, i32
  }
  func.func @transform_9(%arg0: i32) -> (i32, i32) {
    %c0_i32 = arith.constant 0 : i32
    %c0_i32_0 = arith.constant 0 : i32
    %c0_i32_1 = arith.constant 0 : i32
    return %c0_i32, %c0_i32_0 : i32, i32
  }
  func.func @transform_10(%arg0: i32) -> (i32, i32) {
    %c0_i32 = arith.constant 0 : i32
    %c0_i32_0 = arith.constant 0 : i32
    %c0_i32_1 = arith.constant 0 : i32
    return %c0_i32, %c0_i32_0 : i32, i32
  }
  func.func @transform_11(%arg0: i32) -> (i32, i32) {
    %c0_i32 = arith.constant 0 : i32
    %c0_i32_0 = arith.constant 0 : i32
    return %arg0, %c0_i32 : i32, i32
  }
  func.func @transform_12(%arg0: i32) -> (i32, i32) {
    %c0_i32 = arith.constant 0 : i32
    %c0_i32_0 = arith.constant 0 : i32
    return %arg0, %c0_i32 : i32, i32
  }
}

</mosaic_0001>

<bundles_post_ra>
// kernel: temporal_sarsa_forward.1
= control target key start
LH: loop header
LB: loop body
LE: loop exit
PB: predicated region body
PF: predicated region fallthrough
CT: control target
= control target key end

     0   :  { %v736_v1 = vmov 0.0   ;;  %vm737_vm0 = vmmov 0   ;;  %s1101_s0 = inlined_call_operand.vmem [shape: f32[8,128], index: 0, kind: input, shape index: {}]   ;;  %s1102_s1 = inlined_call_operand.vmem [shape: f32[128,128], index: 1, kind: input, shape index: {}]   ;;  %s1103_s2 = inlined_call_operand.vmem [shape: f32[1,128], index: 2, kind: input, shape index: {}]   ;;  %s1104_s3 = inlined_call_operand.vmem [shape: f32[1,128], index: 3, kind: input, shape index: {}]   ;;  %s1105_s4 = inlined_call_operand.vmem [shape: f32[1,128], index: 4, kind: input, shape index: {}]   ;;  %s1106_s5 = inlined_call_operand.vmem [shape: f32[128,128], index: 5, kind: input, shape index: {}]   ;;  %s1107_s6 = inlined_call_operand.vmem [shape: f32[1,128], index: 6, kind: input, shape index: {}]   ;;  %s1108_s7 = inlined_call_operand.vmem [shape: f32[128,128], index: 7, kind: input, shape index: {}]   ;;  %s1109_s8 = inlined_call_operand.vmem [shape: f32[1,128], index: 8, kind: input, shape index: {}]   ;;  %s1110_s9 = inlined_call_operand.vmem [shape: f32[128,128], index: 9, kind: input, shape index: {}]   ;;  %s1111_s10 = inlined_call_operand.vmem [shape: f32[1,128], index: 10, kind: input, shape index: {}]   ;;  %s1112_s11 = inlined_call_operand.vmem [shape: f32[8,128], index: 11, kind: output, shape index: {0}]   ;;  %s1113_s12 = inlined_call_operand.hbm [shape: f32[8,128], index: 12, kind: output, shape index: {1}]  }
   0x1   :  { %v57_v0 = vld [vmem:[%s1102_s1 + $0x78] sm:$0xff]  ;;  %561 = vmatprep.subr.mxu0 %v736_v1  ;;  %v56_v2 = vld [vmem:[%s1102_s1 + $0x70] sm:$0xff]  ;;  %593 = vmatprep.mubr.msk.f32.mxu0 %vm737_vm0, %v736_v1  ;;  %v55_v3 = vld [vmem:[%s1102_s1 + $0x68] sm:$0xff] }
   0x2   :  { %562 = vmatpush3.msra.mxu0 %v57_v0  ;;  %596 = vmatprep.subr.mxu1 %v736_v1  ;;  %v54_v4 = vld [vmem:[%s1102_s1 + $0x60] sm:$0xff] }
   0x3   :  { %563 = vmatprep.subr.mxu0 %v736_v1  ;;  %628 = vmatprep.mubr.msk.f32.mxu1 %vm737_vm0, %v736_v1 }
   0x4   :  { %564 = vmatpush3.msra.mxu0 %v56_v2 }
   0x5   :  { %565 = vmatprep.subr.mxu0 %v736_v1 }
   0x6   :  { %566 = vmatpush3.msra.mxu0 %v55_v3 }
   0x7   :  { %18 = vsyncpa [#allocation3], 0  ;;  %567 = vmatprep.subr.mxu0 %v736_v1  ;;  %v53_v5 = vld [vmem:[%s1102_s1 + $0x58] sm:$0xff]  ;;  %v52_v6 = vld [vmem:[%s1102_s1 + $0x50] sm:$0xff] }
   0x8   :  { %568 = vmatpush3.msra.mxu0 %v54_v4  ;;  %v51_v7 = vld [vmem:[%s1102_s1 + $0x48] sm:$0xff]  ;;  %v50_v8 = vld [vmem:[%s1102_s1 + $0x40] sm:$0xff]  ;;  %v49_v9 = vld [vmem:[%s1102_s1 + $0x38] sm:$0xff] }
   0x9   :  { %569 = vmatprep.subr.mxu0 %v736_v1  ;;  %v48_v10 = vld [vmem:[%s1102_s1 + $0x30] sm:$0xff]  ;;  %v47_v11 = vld [vmem:[%s1102_s1 + $0x28] sm:$0xff]  ;;  %v46_v12 = vld [vmem:[%s1102_s1 + $0x20] sm:$0xff] }
   0xa   :  { %570 = vmatpush3.msra.mxu0 %v53_v5  ;;  %v45_v13 = vld [vmem:[%s1102_s1 + $0x18] sm:$0xff]  ;;  %v44_v14 = vld [vmem:[%s1102_s1 + $0x10] sm:$0xff]  ;;  %v43_v15 = vld [vmem:[%s1102_s1 + $0x8] sm:$0xff] }
   0xb   :  { %571 = vmatprep.subr.mxu0 %v736_v1  ;;  %v42_v16 = vld [vmem:[%s1102_s1] sm:$0xff]  ;;  %v185_v23 = vld [vmem:[%s1106_s5 + $0x78] sm:$0xff]  ;;  %v184_v24 = vld [vmem:[%s1106_s5 + $0x70] sm:$0xff] }
   0xc   :  { %572 = vmatpush3.msra.mxu0 %v52_v6  ;;  %v41_v17 = vld [vmem:[%s1101_s0] sm:$0xff]  ;;  %597 = vmatpush3.msra.mxu1 %v185_v23  ;;  %v183_v25 = vld [vmem:[%s1106_s5 + $0x68] sm:$0xff]  ;;  %v181_v27 = vld [vmem:[%s1106_s5 + $0x58] sm:$0xff] }
   0xd   :  { %573 = vmatprep.subr.mxu0 %v736_v1  ;;  %v487_v18 = vld [vmem:[%s1103_s2] ss:$0 sm:$0xff]  ;;  %598 = vmatprep.subr.mxu1 %v736_v1  ;;  %v180_v28 = vld [vmem:[%s1106_s5 + $0x50] sm:$0xff]  ;;  %v179_v29 = vld [vmem:[%s1106_s5 + $0x48] sm:$0xff] }
   0xe   :  { %574 = vmatpush3.msra.mxu0 %v51_v7  ;;  %599 = vmatpush3.msra.mxu1 %v184_v24  ;;  %v182_v26 = vld [vmem:[%s1106_s5 + $0x60] sm:$0xff]  ;;  %v177_v31 = vld [vmem:[%s1106_s5 + $0x38] sm:$0xff]  ;;  %v176_v32 = vld [vmem:[%s1106_s5 + $0x30] sm:$0xff] }
   0xf   :  { %575 = vmatprep.subr.mxu0 %v736_v1  ;;  %600 = vmatprep.subr.mxu1 %v736_v1  ;;  %v178_v30 = vld [vmem:[%s1106_s5 + $0x40] sm:$0xff]  ;;  %v175_v33 = vld [vmem:[%s1106_s5 + $0x28] sm:$0xff]  ;;  %v173_v35 = vld [vmem:[%s1106_s5 + $0x18] sm:$0xff] }
  0x10   :  { %576 = vmatpush3.msra.mxu0 %v50_v8  ;;  %601 = vmatpush3.msra.mxu1 %v183_v25  ;;  %v174_v34 = vld [vmem:[%s1106_s5 + $0x20] sm:$0xff]  ;;  %v172_v36 = vld [vmem:[%s1106_s5 + $0x10] sm:$0xff]  ;;  %v171_v37 = vld [vmem:[%s1106_s5 + $0x8] sm:$0xff] }
  0x11   :  { %577 = vmatprep.subr.mxu0 %v736_v1  ;;  %602 = vmatprep.subr.mxu1 %v736_v1  ;;  %v170_v38 = vld [vmem:[%s1106_s5] sm:$0xff]  ;;  %v279_v39 = vld [vmem:[%s1108_s7 + $0x78] sm:$0xff]  ;;  %v278_v40 = vld [vmem:[%s1108_s7 + $0x70] sm:$0xff] }
  0x12   :  { %578 = vmatpush3.msra.mxu0 %v49_v9  ;;  %603 = vmatpush3.msra.mxu1 %v182_v26  ;;  %v277_v41 = vld [vmem:[%s1108_s7 + $0x68] sm:$0xff]  ;;  %v276_v42 = vld [vmem:[%s1108_s7 + $0x60] sm:$0xff]  ;;  %v275_v43 = vld [vmem:[%s1108_s7 + $0x58] sm:$0xff] }
  0x13   :  { %579 = vmatprep.subr.mxu0 %v736_v1  ;;  %604 = vmatprep.subr.mxu1 %v736_v1  ;;  %v274_v44 = vld [vmem:[%s1108_s7 + $0x50] sm:$0xff]  ;;  %v273_v45 = vld [vmem:[%s1108_s7 + $0x48] sm:$0xff]  ;;  %v272_v46 = vld [vmem:[%s1108_s7 + $0x40] sm:$0xff] }
  0x14   :  { %580 = vmatpush3.msra.mxu0 %v48_v10  ;;  %605 = vmatpush3.msra.mxu1 %v181_v27  ;;  %v271_v47 = vld [vmem:[%s1108_s7 + $0x38] sm:$0xff]  ;;  %v270_v48 = vld [vmem:[%s1108_s7 + $0x30] sm:$0xff]  ;;  %v269_v49 = vld [vmem:[%s1108_s7 + $0x28] sm:$0xff] }
  0x15   :  { %581 = vmatprep.subr.mxu0 %v736_v1  ;;  %606 = vmatprep.subr.mxu1 %v736_v1  ;;  %v268_v50 = vld [vmem:[%s1108_s7 + $0x20] sm:$0xff]  ;;  %v267_v51 = vld [vmem:[%s1108_s7 + $0x18] sm:$0xff]  ;;  %v266_v52 = vld [vmem:[%s1108_s7 + $0x10] sm:$0xff] }
  0x16   :  { %582 = vmatpush3.msra.mxu0 %v47_v11  ;;  %607 = vmatpush3.msra.mxu1 %v180_v28  ;;  %v488_v60 = vld [vmem:[%s1104_s3] ss:$0 sm:$0xff]  ;;  %v265_v10 = vld [vmem:[%s1108_s7 + $0x8] sm:$0xff]  ;;  %v369_v24 = vld [vmem:[%s1110_s9 + $0x38] sm:$0xff] }
  0x17   :  { %583 = vmatprep.subr.mxu0 %v736_v1  ;;  %608 = vmatprep.subr.mxu1 %v736_v1  ;;  %v489_v63 = vld [vmem:[%s1105_s4] ss:$0 sm:$0xff]  ;;  %v368_v25 = vld [vmem:[%s1110_s9 + $0x30] sm:$0xff]  ;;  %v367_v26 = vld [vmem:[%s1110_s9 + $0x28] sm:$0xff] }
  0x18   :  { %584 = vmatpush3.msra.mxu0 %v46_v12  ;;  %609 = vmatpush3.msra.mxu1 %v179_v29  ;;  %v264_v11 = vld [vmem:[%s1108_s7] sm:$0xff]  ;;  %v377_v12 = vld [vmem:[%s1110_s9 + $0x78] sm:$0xff]  ;;  %v364_v29 = vld [vmem:[%s1110_s9 + $0x10] sm:$0xff] }
  0x19   :  { %585 = vmatprep.subr.mxu0 %v736_v1  ;;  %610 = vmatprep.subr.mxu1 %v736_v1  ;;  %v370_v23 = vld [vmem:[%s1110_s9 + $0x40] sm:$0xff]  ;;  %v365_v28 = vld [vmem:[%s1110_s9 + $0x18] sm:$0xff] }
  0x1a   :  { %586 = vmatpush3.msra.mxu0 %v45_v13  ;;  %611 = vmatpush3.msra.mxu1 %v178_v30  ;;  %v376_v13 = vld [vmem:[%s1110_s9 + $0x70] sm:$0xff]  ;;  %v366_v27 = vld [vmem:[%s1110_s9 + $0x20] sm:$0xff]  ;;  %v363_v30 = vld [vmem:[%s1110_s9 + $0x8] sm:$0xff] }
  0x1b   :  { %587 = vmatprep.subr.mxu0 %v736_v1  ;;  %612 = vmatprep.subr.mxu1 %v736_v1 }
  0x1c   :  { %588 = vmatpush3.msra.mxu0 %v44_v14  ;;  %613 = vmatpush3.msra.mxu1 %v177_v31  ;;  %v375_v14 = vld [vmem:[%s1110_s9 + $0x68] sm:$0xff]  ;;  %v362_v31 = vld [vmem:[%s1110_s9] sm:$0xff] }
  0x1d   :  { %589 = vmatprep.subr.mxu0 %v736_v1  ;;  %614 = vmatprep.subr.mxu1 %v736_v1 }
  0x1e   :  { %590 = vmatpush3.msra.mxu0 %v43_v15  ;;  %615 = vmatpush3.msra.mxu1 %v176_v32  ;;  %v374_v15 = vld [vmem:[%s1110_s9 + $0x60] sm:$0xff] }
  0x1f   :  { %591 = vmatprep.subr.mxu0 %v736_v1  ;;  %616 = vmatprep.subr.mxu1 %v736_v1  ;;  %v491_v32 = vld [vmem:[%s1109_s8] ss:$0 sm:$0xff]  ;;  %s738_s8 = smov [#allocation2]  }
  0x20   :  { %592 = vmatpush3.msra.mxu0 %v42_v16  ;;  %617 = vmatpush3.msra.mxu1 %v175_v33  ;;  %v490_v16 = vld [vmem:[%s1107_s6] ss:$0 sm:$0xff] }
  0x21   :  { %594 = vmatmul.mubr.f32.vlgmr.msra.gmra.mxu0 %v41_v17  ;;  %631 = vmatprep.subr.mxu0 %v736_v1 }
  0x22   :  { %663 = vmatprep.mubr.msk.f32.mxu0 %vm737_vm0, %v736_v1  ;;  %618 = vmatprep.subr.mxu1 %v736_v1 }
  0x23   :  { %619 = vmatpush3.msra.mxu1 %v174_v34  ;;  %632 = vmatpush3.msra.mxu0 %v279_v39 }
  0x24   :  { %620 = vmatprep.subr.mxu1 %v736_v1  ;;  %633 = vmatprep.subr.mxu0 %v736_v1 }
  0x25   :  { %621 = vmatpush3.msra.mxu1 %v173_v35  ;;  %634 = vmatpush3.msra.mxu0 %v278_v40 }
  0x26   :  { %622 = vmatprep.subr.mxu1 %v736_v1  ;;  %635 = vmatprep.subr.mxu0 %v736_v1 }
  0x27   :  { %623 = vmatpush3.msra.mxu1 %v172_v36  ;;  %636 = vmatpush3.msra.mxu0 %v277_v41 }
  0x28   :  { %624 = vmatprep.subr.mxu1 %v736_v1  ;;  %637 = vmatprep.subr.mxu0 %v736_v1 }
  0x29   :  { %625 = vmatpush3.msra.mxu1 %v171_v37  ;;  %638 = vmatpush3.msra.mxu0 %v276_v42  ;;  %v492_v42 = vld [vmem:[%s1111_s10] ss:$0 sm:$0xff] }
  0x2a   :  { %626 = vmatprep.subr.mxu1 %v736_v1  ;;  %639 = vmatprep.subr.mxu0 %v736_v1 }
  0x2b   :  { %627 = vmatpush3.msra.mxu1 %v170_v38  ;;  %640 = vmatpush3.msra.mxu0 %v275_v43 }
  0x2c   :  { %666 = vmatprep.subr.mxu1 %v736_v1  ;;  %641 = vmatprep.subr.mxu0 %v736_v1 }
  0x2d   :  { %642 = vmatpush3.msra.mxu0 %v274_v44 }
  0x2e   :  { %643 = vmatprep.subr.mxu0 %v736_v1 }
  0x2f   :  { %644 = vmatpush3.msra.mxu0 %v273_v45 }
  0x30   :  { %645 = vmatprep.subr.mxu0 %v736_v1 }
  0x31   :  { %646 = vmatpush3.msra.mxu0 %v272_v46 }
  0x32   :  { %647 = vmatprep.subr.mxu0 %v736_v1 }
  0x33   :  { %648 = vmatpush3.msra.mxu0 %v271_v47 }
  0x34   :  { %649 = vmatprep.subr.mxu0 %v736_v1 }
  0x35   :  { %650 = vmatpush3.msra.mxu0 %v270_v48 }
  0x36   :  { %651 = vmatprep.subr.mxu0 %v736_v1 }
  0x37   :  { %652 = vmatpush3.msra.mxu0 %v269_v49 }
  0x38   :  { %653 = vmatprep.subr.mxu0 %v736_v1 }
  0x39   :  { %654 = vmatpush3.msra.mxu0 %v268_v50 }
  0x3a   :  { %655 = vmatprep.subr.mxu0 %v736_v1 }
  0x3b   :  { %656 = vmatpush3.msra.mxu0 %v267_v51 }
  0x3c   :  { %657 = vmatprep.subr.mxu0 %v736_v1 }
  0x3d   :  { %658 = vmatpush3.msra.mxu0 %v266_v52 }
  0x3e   :  { %659 = vmatprep.subr.mxu0 %v736_v1 }
  0x3f   :  { %660 = vmatpush3.msra.mxu0 %v265_v10 }
  0x40   :  { %661 = vmatprep.subr.mxu0 %v736_v1 }
  0x41   :  { %662 = vmatpush3.msra.mxu0 %v264_v11 }
  0xe1   :  { %v131_v19 = vpop.f32.mrf.mxu0 }
  0xe2   :  { %v882_v20 = vadd.f32 %v487_v18, %v131_v19 }
  0xe3   :  { %v595_v21 = vpop.f32.mrf.mxu0 }
  0xe4   :  { %135 = vadd.xlane.f32.xlu0 %v882_v20  ;;  %v138_v22 = vmul.f32 %v882_v20, %v882_v20  ;;  %v372_v21 = vld [vmem:[%s1110_s9 + $0x50] sm:$0xff] }
  0xe8   :  { %139 = vadd.xlane.f32.xlu0 %v138_v22  ;;  %v371_v22 = vld [vmem:[%s1110_s9 + $0x48] sm:$0xff] }
 0x16d   :  { %v136_v53 = vpop.xlane.xlu0 %135 }
 0x16e   :  { %v137_v54 = vmul.f32 0.03125, %v136_v53 }
 0x170   :  { %v142_v56 = vmul.f32 %v137_v54, %v137_v54 }
 0x171   :  { %v140_v55 = vpop.xlane.xlu0 %139 }
 0x172   :  { %v141_v57 = vmul.f32 0.03125, %v140_v55 }
 0x174   :  { %v143_v58 = vsub.f32 %v141_v57, %v142_v56 }
 0x176   :  { %v144_v59 = vadd.f32 1e-05, %v143_v58 }
 0x178   :  { %704 = vrsqrt.f32 %v144_v59 }
 0x185   :  { %v705_v61 = vpop.eup %704 }
 0x186   :  { %v153_v62 = vmul.f32 %v705_v61, %v488_v60 }
 0x188   :  { %v156_v0 = vmul.f32 %v153_v62, %v137_v54  ;;  %v154_v2 = vmul.f32 %v153_v62, %v882_v20  ;;  %v373_v20 = vld [vmem:[%s1110_s9 + $0x58] sm:$0xff]  ;;  %s477_s9 = sshll.u32 %s738_s8, 4  ;;  %s478_s9 = int_to_ptr.vmem [resolvable:$true] %s477_s9 }
 0x189   :  { %s714_s30 = scalar_lea.vmem %s478_s9, 128  ;;  %p719_p1 = scmp.lt.s32.totalorder %s478_s9, %s478_s9 }
 0x18a   :  { %v163_v3 = vsub.f32 %v489_v63, %v156_v0  ;;  %p715_p0 = scmp.ne.s32.totalorder %s478_s9, %s714_s30  ;;  %p720_p2 = scmp.lt.s32.totalorder %s714_s30, %s714_s30 }
 0x18c   :  { %v164_v4 = vadd.f32 %v163_v3, %v154_v2  ;;  %p721_p3 = por %p720_p2, %p719_p1 }
 0x18e   :  { %v166_v5 = vmul.f32 0.70710677, %v164_v4  ;;  %v165_v7 = vmul.f32 0.5, %v164_v4  ;;  %p722_p4 = pnand %p721_p3, %p715_p0 }
 0x190   :  { %706 = verf.f32 %v166_v5 }
 0x19d   :  { %v707_v6 = vpop.eup %706 }
 0x19e   :  { %v168_v8 = vadd.f32 1.0, %v707_v6 }
 0x1a0   :  { %v169_v9 = vmul.f32 %v168_v8, %v165_v7 }
 0x1a2   :  { %629 = vmatmul.mubr.f32.vlgmr.msra.gmra.mxu1 %v169_v9 }
 0x1a3   :  { %698 = vmatprep.mubr.msk.f32.mxu1 %vm737_vm0, %v736_v1  ;;  %667 = vmatpush3.msra.mxu1 %v377_v12 }
 0x1a4   :  { %668 = vmatprep.subr.mxu1 %v736_v1 }
 0x1a5   :  { %669 = vmatpush3.msra.mxu1 %v376_v13 }
 0x1a6   :  { %670 = vmatprep.subr.mxu1 %v736_v1 }
 0x1a7   :  { %671 = vmatpush3.msra.mxu1 %v375_v14 }
 0x1a8   :  { %672 = vmatprep.subr.mxu1 %v736_v1 }
 0x1a9   :  { %673 = vmatpush3.msra.mxu1 %v374_v15 }
 0x1aa   :  { %674 = vmatprep.subr.mxu1 %v736_v1 }
 0x1ab   :  { %675 = vmatpush3.msra.mxu1 %v373_v20 }
 0x1ac   :  { %676 = vmatprep.subr.mxu1 %v736_v1 }
 0x1ad   :  { %677 = vmatpush3.msra.mxu1 %v372_v21 }
 0x1ae   :  { %678 = vmatprep.subr.mxu1 %v736_v1 }
 0x1af   :  { %679 = vmatpush3.msra.mxu1 %v371_v22 }
 0x1b0   :  { %680 = vmatprep.subr.mxu1 %v736_v1 }
 0x1b1   :  { %681 = vmatpush3.msra.mxu1 %v370_v23 }
 0x1b2   :  { %682 = vmatprep.subr.mxu1 %v736_v1 }
 0x1b3   :  { %683 = vmatpush3.msra.mxu1 %v369_v24 }
 0x1b4   :  { %684 = vmatprep.subr.mxu1 %v736_v1 }
 0x1b5   :  { %685 = vmatpush3.msra.mxu1 %v368_v25 }
 0x1b6   :  { %686 = vmatprep.subr.mxu1 %v736_v1 }
 0x1b7   :  { %687 = vmatpush3.msra.mxu1 %v367_v26 }
 0x1b8   :  { %688 = vmatprep.subr.mxu1 %v736_v1 }
 0x1b9   :  { %689 = vmatpush3.msra.mxu1 %v366_v27 }
 0x1ba   :  { %690 = vmatprep.subr.mxu1 %v736_v1 }
 0x1bb   :  { %691 = vmatpush3.msra.mxu1 %v365_v28 }
 0x1bc   :  { %692 = vmatprep.subr.mxu1 %v736_v1 }
 0x1bd   :  { %693 = vmatpush3.msra.mxu1 %v364_v29 }
 0x1be   :  { %694 = vmatprep.subr.mxu1 %v736_v1 }
 0x1bf   :  { %695 = vmatpush3.msra.mxu1 %v363_v30 }
 0x1c0   :  { %696 = vmatprep.subr.mxu1 %v736_v1  ;;  %v455_v1 = vlaneseq }
 0x1c1   :  { %697 = vmatpush3.msra.mxu1 %v362_v31 }
 0x1c2   :  { %v456_v41 = vand.u32 127, %v455_v1 }
 0x1c4   :  { %vm457_vm1 = vcmp.lt.s32.totalorder %v456_v41, 4 }
 0x262   :  { %v259_v17 = vpop.f32.mrf.mxu1 }
 0x263   :  { %v260_v18 = vadd.f32 %v490_v16, %v259_v17 }
 0x264   :  { %v630_v19 = vpop.f32.mrf.mxu1 }
 0x265   :  { %263 = vst [vmem:[#allocation2] sm:$0xff] %v260_v18  ;;  %664 = vmatmul.mubr.f32.vlgmr.msra.gmra.mxu0 %v260_v18 }
 0x325   :  { %v353_v33 = vpop.f32.mrf.mxu0 }
 0x326   :  { %v354_v34 = vadd.f32 %v491_v32, %v353_v33 }
 0x327   :  { %v665_v35 = vpop.f32.mrf.mxu0 }
 0x328   :  { %v358_v36 = vmul.f32 0.70710677, %v354_v34  ;;  %v357_v38 = vmul.f32 0.5, %v354_v34 }
 0x32a   :  { %708 = verf.f32 %v358_v36 }
 0x337   :  { %v709_v37 = vpop.eup %708 }
 0x338   :  { %v360_v39 = vadd.f32 1.0, %v709_v37 }
 0x33a   :  { %v361_v40 = vmul.f32 %v360_v39, %v357_v38 }
 0x33c   :  { %699 = vmatmul.mubr.f32.vlgmr.msra.gmra.mxu1 %v361_v40 }
 0x3fc   :  { %v451_v43 = vpop.f32.mrf.mxu1 }
 0x3fd   :  { %v452_v44 = vadd.f32 %v492_v42, %v451_v43 }
 0x3fe   :  { %v700_v45 = vpop.f32.mrf.mxu1 }
 0x3ff   :  { %v458_v46 = vsel %vm457_vm1, %v452_v44, -inf }
 0x400   :  { %459 = vmax.xlane.f32.xlu1 %v458_v46 }
 0x489   :  { %v460_v47 = vpop.xlane.xlu1 %459 }
 0x48a   :  { %v461_v48 = vsub.f32 %v458_v46, %v460_v47 }
 0x48c   :  { %v462_v49 = vmul.f32 1.442695, %v461_v48 }
 0x48e   :  { %710 = vpow2.f32 %v462_v49 }
 0x49b   :  { %v711_v50 = vpop.eup %710 }
 0x49c   :  { %464 = vadd.xlane.f32.xlu1 %v711_v50 }
 0x49d   :  { %725 = shalt.err (!%p722_p4)
}
 0x49e   :  { %480 = dma.vmem_to_hbm [thread:$0]  %s478_s9, 128, %s1113_s12, [#allocation3]  }
 0x525   :  { %v465_v51 = vpop.xlane.xlu1 %464 }
 0x526   :  { %712 = vrcp.f32 %v465_v51 }
 0x533   :  { %v713_v52 = vpop.eup %712 }
 0x534   :  { %v467_v53 = vmul.f32 %v713_v52, %v711_v50 }
 0x536   :  { %468 = vst [vmem:[%s1112_s11] sm:$0xff] %v467_v53 }
 0x537   :  { %734 = dma.done.wait [#allocation3], 128  }
 0x538   :  { %735 = vsyncadd [#allocation3], 4294967168 }
 0x539   :  { %486 = vsyncpa [#allocation3], 1 }

</bundles_post_ra>
